<compile_context>
chip_gen: v6e
topology: v6e:2x2x1
jax: 0.10.0
libtpu: 0.0.40
codegen_flags: <defaults>
</compile_context>

<pallas_src>
import functools
import math

import numpy as np
import jax
import jax.numpy as jnp
from jax.experimental import pallas as pl
from jax.experimental.pallas import tpu as pltpu


def make_freqs(num_freqs: int, linspace: bool = True) -> np.ndarray:
    """Frequency vector matching the torch module (float32 like torch.linspace)."""
    if linspace:
        return np.linspace(1.0, float(num_freqs + 1), num_freqs, dtype=np.float32)
    exps = np.linspace(0.0, float(num_freqs - 1), num_freqs, dtype=np.float32)
    return (2.0 ** exps).astype(np.float32)


def _round_up(n: int, m: int) -> int:
    return ((n + m - 1) // m) * m


def _sublane(dtype) -> int:
    # 8 rows for 32-bit dtypes, 16 for 16-bit, 32 for 8-bit.
    return max(8, 32 // max(jnp.dtype(dtype).itemsize, 1))


def _pick_fold(rows: int, out_dim: int, two_f: int,
               max_width: int = 4096, max_pieces: int = 256) -> int:
    """Number of consecutive logical rows folded into one kernel row so the
    kernel row width (k * out_dim) is a multiple of 128 lanes."""
    if out_dim % 128 == 0 or rows <= 1:
        return 1
    k0 = 128 // math.gcd(out_dim, 128)
    best, k = 1, k0
    while k <= rows and k * out_dim <= max_width and k * two_f <= max_pieces:
        if rows % k == 0:
            best = k
            if k * out_dim >= 512:
                break
        k += k0
    return best


def _pick_tile_rows(rows_f: int, out_width: int, out_itemsize: int, sub: int,
                    target_out_block_bytes: int = 4 * 1024 * 1024) -> int:
    per_row = max(out_width * out_itemsize, 1)
    t = max(sub, (target_out_block_bytes // per_row) // sub * sub)
    # Keep ~8 grid steps when there is enough work (megacore sharding on
    # v7x), but never shrink below 128 rows just to create steps.
    steps_cap = max(_round_up(-(-rows_f // 8), sub), 128)
    t = min(t, steps_cap)
    return max(sub, min(t, _round_up(rows_f, sub)))


def _freq_embed_kernel(coef_ref, phase_ref, x_ref, o_ref, *, d, k, two_f):
    """One grid step: (tile_r, k*d) -> (tile_r, k*2*F*d).

    Builds the lane-replicated slab xb (cheap copies), then runs a single
    dense sin(xb * coef + phase) and one dense full-width store.
    """
    x = x_ref[...].astype(jnp.float32)                   # (tile_r, k*d)
    if k == 1:
        xb = jnp.concatenate([x] * two_f, axis=-1)       # (tile_r, 2F*d)
    else:
        pieces = []
        for j in range(k):
            cj = x[:, j * d:(j + 1) * d]
            pieces.extend([cj] * two_f)
        xb = jnp.concatenate(pieces, axis=-1)            # (tile_r, k*2F*d)
    out = jnp.sin(xb * coef_ref[...] + phase_ref[...])   # one dense EUP pass
    o_ref[...] = out.astype(o_ref.dtype)


def freq_embed(x: jax.Array, num_freqs: int = 4, linspace: bool = True,
               out_dtype=None) -> jax.Array:
    """Pallas implementation of FreqEmbed.forward for inputs of shape (..., D)."""
    freqs = make_freqs(num_freqs, linspace)
    two_f = 2 * num_freqs

    orig_shape = x.shape
    d = int(orig_shape[-1])
    rows = int(np.prod(orig_shape[:-1]))
    out_dim = two_f * d

    if out_dtype is None:
        out_dtype = jnp.promote_types(x.dtype, jnp.float32)
        if (jnp.dtype(out_dtype).itemsize > 4
                or not jnp.issubdtype(out_dtype, jnp.floating)):
            out_dtype = jnp.float32      # TPU: clamp f64 / odd promotions to f32
    out_dtype = jnp.dtype(out_dtype)

    # Fold k consecutive logical rows per kernel row for lane density.
    k = _pick_fold(rows, out_dim, two_f)
    rows_f = rows // k
    d_f = k * d
    out_dim_f = k * out_dim

    x2 = x.reshape(rows_f, d_f)

    # Compile-time per-lane constants: coef = freq*pi; phase selects sin/cos
    # via cos(t) = sin(t + pi/2). Tiled k times for the folded layout.
    freqs64 = freqs.astype(np.float64)
    coef_base = np.repeat(freqs64 * np.pi, d)                       # (F*d,)
    coef_row = np.concatenate([coef_base, coef_base])               # (2F*d,)
    phase_row = np.concatenate([np.zeros(num_freqs * d),
                                np.full(num_freqs * d, np.pi / 2.0)])
    coef = jnp.asarray(np.tile(coef_row, k).astype(np.float32).reshape(1, out_dim_f))
    phase = jnp.asarray(np.tile(phase_row, k).astype(np.float32).reshape(1, out_dim_f))

    sub = max(_sublane(x.dtype), _sublane(out_dtype))
    tile_r = _pick_tile_rows(rows_f, out_dim_f, out_dtype.itemsize, sub)
    grid = (pl.cdiv(rows_f, tile_r),)   # partial final block is masked by Pallas

    n_out = rows * out_dim
    cost = pl.CostEstimate(
        flops=2 * n_out,
        transcendentals=n_out,
        bytes_accessed=rows * d * jnp.dtype(x.dtype).itemsize
                       + n_out * out_dtype.itemsize,
    )

    out2 = pl.pallas_call(
        functools.partial(_freq_embed_kernel, d=d, k=k, two_f=two_f),
        out_shape=jax.ShapeDtypeStruct((rows_f, out_dim_f), out_dtype),
        grid_spec=pltpu.PrefetchScalarGridSpec(
            num_scalar_prefetch=0,
            grid=grid,
            in_specs=[
                pl.BlockSpec((1, out_dim_f), lambda i: (0, 0)),   # coef (small)
                pl.BlockSpec((1, out_dim_f), lambda i: (0, 0)),   # phase (small)
                pl.BlockSpec((tile_r, d_f), lambda i: (i, 0)),    # x row tile
            ],
            out_specs=pl.BlockSpec((tile_r, out_dim_f), lambda i: (i, 0)),
        ),
        compiler_params=pltpu.CompilerParams(
            dimension_semantics=("parallel",),
            vmem_limit_bytes=32 * 1024 * 1024,
        ),
        cost_estimate=cost,
    )(coef, phase, x2)

    return out2.reshape(*orig_shape[:-1], out_dim)


def freq_embed_ref(x: jax.Array, num_freqs: int = 4, linspace: bool = True) -> jax.Array:
    """Pure-JAX reference mirroring the PyTorch forward exactly."""
    freqs = make_freqs(num_freqs, linspace)
    embed = []
    for f in (jnp.sin, jnp.cos):
        for fr in freqs:
            embed.append(f(jnp.float32(fr) * x * jnp.pi))
    return jnp.concatenate(embed, axis=-1)


if __name__ == "__main__":
    num_freqs = 4

    # 1) Typical hidden-feature input (out_dim already 128-lane dense, k = 1).
    B, S, D = 2, 8, 16
    x = jax.random.normal(jax.random.PRNGKey(0), (B, S, D), dtype=jnp.float32)
    out = jax.block_until_ready(freq_embed(x, num_freqs=num_freqs, linspace=True))
    ref = freq_embed_ref(x, num_freqs=num_freqs, linspace=True)
    assert out.shape == (B, S, 2 * num_freqs * D), out.shape
    np.testing.assert_allclose(np.asarray(out), np.asarray(ref), rtol=1e-5, atol=5e-5)

    # 2) Small-D coordinate-style input -> exercises the row-folding (lane-dense)
    #    path and the pow-of-2 frequencies.
    x2 = jax.random.normal(jax.random.PRNGKey(1), (4, 16, 4), dtype=jnp.float32)
    out2 = jax.block_until_ready(freq_embed(x2, num_freqs=num_freqs, linspace=False))
    ref2 = freq_embed_ref(x2, num_freqs=num_freqs, linspace=False)
    np.testing.assert_allclose(np.asarray(out2), np.asarray(ref2), rtol=1e-5, atol=5e-5)

    # 3) Ragged row count -> partial final block handled by Pallas masking
    #    (no pad / slice copies in the wrapper).
    x3 = jax.random.normal(jax.random.PRNGKey(2), (3, 5, 16), dtype=jnp.float32)
    out3 = jax.block_until_ready(freq_embed(x3, num_freqs=num_freqs, linspace=True))
    ref3 = freq_embed_ref(x3, num_freqs=num_freqs, linspace=True)
    np.testing.assert_allclose(np.asarray(out3), np.asarray(ref3), rtol=1e-5, atol=5e-5)

    print("KERNEL_OK")
</pallas_src>

<mosaic_0001>
module attributes {stable_mosaic.version = 11 : i64} {
  func.func @_freq_embed_kernel(%arg0: i32, %arg1: memref<1x128xf32, #tpu.memory_space<vmem>>, %arg2: memref<1x128xf32, #tpu.memory_space<vmem>>, %arg3: memref<16x16xf32, #tpu.memory_space<vmem>>, %arg4: memref<16x128xf32, #tpu.memory_space<vmem>>) attributes {dimension_semantics = [#tpu.dimension_semantics<parallel>], iteration_bounds = array<i64: 1>, scalar_prefetch = 0 : i64, scratch_operands = 0 : i64, tpu.core_type = #tpu.core_type<tc>, window_params = [{pipeline_mode = #tpu.pipeline_mode<synchronous>, transform_indices = @transform_0, window_bounds = array<i64: 1, 128>}, {pipeline_mode = #tpu.pipeline_mode<synchronous>, transform_indices = @transform_1, window_bounds = array<i64: 1, 128>}, {transform_indices = @transform_2, window_bounds = array<i64: 16, 16>}, {transform_indices = @transform_3, window_bounds = array<i64: 16, 128>}]} {
    %c0 = arith.constant 0 : index
    %c0_0 = arith.constant 0 : index
    %0 = vector.load %arg3[%c0, %c0_0] : memref<16x16xf32, #tpu.memory_space<vmem>>, vector<16x16xf32>
    %1 = tpu.concatenate %0, %0, %0, %0, %0, %0, %0, %0 in 1 : vector<16x16xf32>, vector<16x16xf32>, vector<16x16xf32>, vector<16x16xf32>, vector<16x16xf32>, vector<16x16xf32>, vector<16x16xf32>, vector<16x16xf32> -> vector<16x128xf32>
    %c0_1 = arith.constant 0 : index
    %c0_2 = arith.constant 0 : index
    %2 = vector.load %arg1[%c0_1, %c0_2] : memref<1x128xf32, #tpu.memory_space<vmem>>, vector<1x128xf32>
    %3 = vector.broadcast %2 : vector<1x128xf32> to vector<16x128xf32>
    %4 = arith.mulf %1, %3 : vector<16x128xf32>
    %c0_3 = arith.constant 0 : index
    %c0_4 = arith.constant 0 : index
    %5 = vector.load %arg2[%c0_3, %c0_4] : memref<1x128xf32, #tpu.memory_space<vmem>>, vector<1x128xf32>
    %6 = vector.broadcast %5 : vector<1x128xf32> to vector<16x128xf32>
    %7 = arith.addf %4, %6 : vector<16x128xf32>
    %8 = math.sin %7 : vector<16x128xf32>
    %c0_5 = arith.constant 0 : index
    %c0_6 = arith.constant 0 : index
    %9 = vector.load %arg4[%c0_5, %c0_6] : memref<16x128xf32, #tpu.memory_space<vmem>>, vector<16x128xf32>
    tpu.vector_store %arg4[%c0_5, %c0_6], %8 {strides = array<i32>} : memref<16x128xf32, #tpu.memory_space<vmem>>, vector<16x128xf32>,
    return
  }
  func.func @transform_0(%arg0: i32) -> (i32, i32) {
    %c0_i32 = arith.constant 0 : i32
    %c0_i32_0 = arith.constant 0 : i32
    %c0_i32_1 = arith.constant 0 : i32
    return %c0_i32, %c0_i32_0 : i32, i32
  }
  func.func @transform_1(%arg0: i32) -> (i32, i32) {
    %c0_i32 = arith.constant 0 : i32
    %c0_i32_0 = arith.constant 0 : i32
    %c0_i32_1 = arith.constant 0 : i32
    return %c0_i32, %c0_i32_0 : i32, i32
  }
  func.func @transform_2(%arg0: i32) -> (i32, i32) {
    %c0_i32 = arith.constant 0 : i32
    %c0_i32_0 = arith.constant 0 : i32
    return %arg0, %c0_i32 : i32, i32
  }
  func.func @transform_3(%arg0: i32) -> (i32, i32) {
    %c0_i32 = arith.constant 0 : i32
    %c0_i32_0 = arith.constant 0 : i32
    return %arg0, %c0_i32 : i32, i32
  }
}

</mosaic_0001>

<bundles_post_ra>
// kernel: tpu_custom_call.1
= control target key start
LH: loop header
LB: loop body
LE: loop exit
PB: predicated region body
PF: predicated region fallthrough
CT: control target
= control target key end

     0   :  { %8 = vsyncpa [#allocation3], 0  ;;  %s601_s0 = inlined_call_operand.hbm [shape: f32[1,128], index: 0, kind: input, shape index: {}]   ;;  %s602_s1 = inlined_call_operand.vmem [shape: f32[1,128], index: 1, kind: input, shape index: {}]   ;;  %s603_s2 = inlined_call_operand.hbm [shape: f32[16,16], index: 2, kind: input, shape index: {}]   ;;  %s604_s3 = inlined_call_operand.hbm [shape: f32[16,128], index: 3, kind: output, shape index: {}]  }
   0x1   :  { %9 = vsyncpa [#allocation6], 0 }
   0x2   :  { %10 = vsyncpa [#allocation4], 0  ;;  %s464_s12 = smov [#allocation2]   ;;  %s465_s14 = smov [#allocation5]  }
   0x3   :  { %s17_s13 = sshll.u32 %s464_s12, 4  ;;  %s28_s15 = sshll.u32 %s465_s14, 4  ;;  %s18_s13 = int_to_ptr.vmem [resolvable:$true] %s17_s13  ;;  %s29_s15 = int_to_ptr.vmem [resolvable:$true] %s28_s15 }
   0x4   :  { %s406_s16 = scalar_lea.vmem %s18_s13, 16  ;;  %s410_s17 = scalar_lea.vmem %s18_s13, 32 }
   0x5   :  { %p407_p0 = scmp.ne.s32.totalorder %s18_s13, %s406_s16  ;;  %p411_p1 = scmp.lt.s32.totalorder %s18_s13, %s18_s13 }
   0x6   :  { %p412_p2 = scmp.lt.s32.totalorder %s410_s17, %s406_s16 }
   0x8   :  { %p413_p3 = por %p412_p2, %p411_p1 }
   0xa   :  { %p414_p4 = pnand %p413_p3, %p407_p0 }
   0xc   :  { %417 = shalt.err (!%p414_p4)
}
   0xd   :  { %20 = dma.hbm_to_vmem [thread:$0]  %s601_s0, 16, %s18_s13, [#allocation3]  }
   0xe   :  { %s426_s20 = scalar_lea.vmem %s29_s15, 256  ;;  %p431_p6 = scmp.lt.s32.totalorder %s29_s15, %s29_s15 }
   0xf   :  { %p427_p5 = scmp.ne.s32.totalorder %s29_s15, %s426_s20  ;;  %p432_p7 = scmp.lt.s32.totalorder %s426_s20, %s426_s20 }
  0x11   :  { %p433_p8 = por %p432_p7, %p431_p6 }
  0x13   :  { %p434_p9 = pnand %p433_p8, %p427_p5 }
  0x15   :  { %437 = shalt.err (!%p434_p9)
}
  0x16   :  { %s466_s21 = smov 128   ;;  %s467_s22 = smov 8  }
  0x17   :  { %34 = dma.hbm_to_vmem [thread:$0]  %s603_s2, 256, %s29_s15, [#allocation6], %s466_s21, %s466_s21, %s467_s22  }
  0x18   :  { %458 = dma.done.wait [#allocation3], 16  }
  0x19   :  { %459 = vsyncadd [#allocation3], 4294967280 }
  0x1a   :  { %460 = dma.done.wait [#allocation6], 256  }
  0x1b   :  { %461 = vsyncadd [#allocation6], 4294967040  ;;  %v41_v0 = vld [vmem:[#allocation5] sm:$0xff]  ;;  %s468_s0 = smov 32   ;;  %s469_s25 = smov 16   ;;  %v42_v1 = vld [vmem:[#allocation5 + $0x8] sm:$0xff] }
  0x1c   :  { %51 = vrot.lane.b32.xlu1 %v41_v0, %s468_s0  ;;  %45 = vrot.lane.b32.xlu0 %v41_v0, %s469_s25  ;;  %s470_s26 = smov 48   ;;  %s471_s27 = smov 64   ;;  %vm87_vm0 = vcmask 130048   ;;  %vm90_vm1 = vcmask 261120   ;;  %vm93_vm2 = vcmask 392192   ;;  %vm96_vm3 = vcmask 523264  }
  0x1d   :  { %s472_s28 = smov 80   ;;  %s473_s2 = smov 96   ;;  %vm99_vm4 = vcmask 654336   ;;  %vm102_vm5 = vcmask 785408   ;;  %vm105_vm6 = vcmask 916480  }
  0x1e   :  { %s474_s29 = smov 112   ;;  %v354_v24 = vld [vmem:[#allocation2] ss:$0 sm:$0xff]  ;;  %v475_v57 = vmov 2102212464  }
  0x1f   :  { %v355_v29 = vld [vmem:[%s602_s1] ss:$0 sm:$0xff]  ;;  %v476_v59 = vmov 920167782   ;;  %s481_s1 = smov [#allocation7]  }
  0x20   :  { %53 = vrot.lane.b32.xlu1 %v42_v1, %s468_s0  ;;  %47 = vrot.lane.b32.xlu0 %v42_v1, %s469_s25  ;;  %s341_s5 = sshll.u32 %s481_s1, 4  ;;  %s342_s5 = int_to_ptr.vmem [resolvable:$true] %s341_s5 }
  0x21   :  { %s438_s6 = scalar_lea.vmem %s342_s5, 256  ;;  %p443_p11 = scmp.lt.s32.totalorder %s342_s5, %s342_s5 }
  0x22   :  { %p439_p10 = scmp.ne.s32.totalorder %s342_s5, %s438_s6  ;;  %p444_p12 = scmp.lt.s32.totalorder %s438_s6, %s438_s6 }
  0x24   :  { %59 = vrot.lane.b32.xlu1 %v42_v1, %s470_s26  ;;  %57 = vrot.lane.b32.xlu0 %v41_v0, %s470_s26  ;;  %p445_p13 = por %p444_p12, %p443_p11 }
  0x26   :  { %p446_p0 = pnand %p445_p13, %p439_p10 }
  0x28   :  { %65 = vrot.lane.b32.xlu1 %v42_v1, %s471_s27  ;;  %63 = vrot.lane.b32.xlu0 %v41_v0, %s471_s27 }
  0x2c   :  { %71 = vrot.lane.b32.xlu1 %v42_v1, %s472_s28  ;;  %69 = vrot.lane.b32.xlu0 %v41_v0, %s472_s28 }
  0x30   :  { %77 = vrot.lane.b32.xlu1 %v42_v1, %s473_s2  ;;  %75 = vrot.lane.b32.xlu0 %v41_v0, %s473_s2 }
  0x34   :  { %83 = vrot.lane.b32.xlu1 %v42_v1, %s474_s29  ;;  %81 = vrot.lane.b32.xlu0 %v41_v0, %s474_s29 }
  0x8e   :  { %v52_v2 = vpop.permute.xlu1 %51  ;;  %v46_v3 = vpop.permute.xlu0 %45 }
  0x8f   :  { %v88_v12 = vsel %vm87_vm0, %v41_v0, %v46_v3  ;;  %v477_v0 = vmov 1326507024  }
  0x90   :  { %v91_v15 = vsel %vm90_vm1, %v88_v12, %v52_v2 }
  0x92   :  { %v54_v4 = vpop.permute.xlu1 %53  ;;  %v48_v5 = vpop.permute.xlu0 %47 }
  0x93   :  { %v89_v13 = vsel %vm87_vm0, %v42_v1, %v48_v5 }
  0x94   :  { %v92_v14 = vsel %vm90_vm1, %v89_v13, %v54_v4 }
  0x96   :  { %v60_v6 = vpop.permute.xlu1 %59  ;;  %v58_v7 = vpop.permute.xlu0 %57 }
  0x97   :  { %v95_v18 = vsel %vm93_vm2, %v92_v14, %v60_v6  ;;  %v94_v19 = vsel %vm93_vm2, %v91_v15, %v58_v7  ;;  %v478_v6 = vmov 683565275  }
  0x9a   :  { %v66_v8 = vpop.permute.xlu1 %65  ;;  %v64_v9 = vpop.permute.xlu0 %63 }
  0x9b   :  { %v98_v20 = vsel %vm96_vm3, %v95_v18, %v66_v8  ;;  %v97_v21 = vsel %vm96_vm3, %v94_v19, %v64_v9  ;;  %v479_v8 = vmov 2475754826  }
  0x9e   :  { %v72_v10 = vpop.permute.xlu1 %71  ;;  %v70_v11 = vpop.permute.xlu0 %69 }
  0x9f   :  { %v101_v22 = vsel %vm99_vm4, %v98_v20, %v72_v10  ;;  %v100_v23 = vsel %vm99_vm4, %v97_v21, %v70_v11  ;;  %v480_v11 = vmov 2131351028  }
  0xa2   :  { %v78_v16 = vpop.permute.xlu1 %77  ;;  %v76_v17 = vpop.permute.xlu0 %75 }
  0xa3   :  { %v104_v25 = vsel %vm102_vm5, %v101_v22, %v78_v16  ;;  %v103_v26 = vsel %vm102_vm5, %v100_v23, %v76_v17 }
  0xa6   :  { %v84_v27 = vpop.permute.xlu1 %83  ;;  %v82_v28 = vpop.permute.xlu0 %81 }
  0xa7   :  { %v107_v30 = vsel %vm105_vm6, %v104_v25, %v84_v27  ;;  %v106_v31 = vsel %vm105_vm6, %v103_v26, %v82_v28 }
  0xa8   :  { %v116_v32 = vmul.f32 %v354_v24, %v107_v30  ;;  %v115_v33 = vmul.f32 %v354_v24, %v106_v31 }
  0xaa   :  { %v514_v34 = vadd.f32 %v355_v29, %v116_v32  ;;  %v516_v35 = vadd.f32 %v355_v29, %v115_v33 }
  0xac   :  { %v233_v36 = vand.u32 2139095040, %v514_v34  ;;  %v129_v37 = vand.u32 2139095040, %v516_v35  ;;  %v126_v38 = vand.u32 2147483647, %v516_v35  ;;  %v230_v43 = vand.u32 2147483647, %v514_v34 }
  0xad   :  { %vm128_vm5 = vcmp.lt.s32.totalorder %v516_v35, 0 }
  0xae   :  { %v234_v39 = vshrl.u32 %v233_v36, 23  ;;  %v130_v40 = vshrl.u32 %v129_v37, 23  ;;  %v133_v44 = vand.u32 8388607, %v126_v38  ;;  %v526_v47 = vand.u32 8388607, %v230_v43 }
  0xaf   :  { %vm127_vm6 = vcmp.le.f32.partialorder %v126_v38, 0.7853982 }
  0xb0   :  { %v360_v41 = vadd.s32 4294967169, %v234_v39  ;;  %v356_v42 = vadd.s32 4294967169, %v130_v40  ;;  %v134_v50 = vor.u32 8388608, %v133_v44  ;;  %v238_v56 = vor.u32 8388608, %v526_v47 }
  0xb2   :  { %v240_v45 = vadd.s32 1, %v360_v41  ;;  %v136_v46 = vadd.s32 1, %v356_v42  ;;  %v533_v62 = vshll.u32 %v134_v50, 8 }
  0xb4   :  { %vm241_vm7 = vcmp.gt.s32.totalorder %v240_v45, 0  ;;  %vm137_vm8 = vcmp.gt.s32.totalorder %v136_v46, 0 }
  0xb5   :  { %v242_v48 = vsel %vm241_vm7, %v240_v45, 0  ;;  %v138_v49 = vsel %vm137_vm8, %v136_v46, 0  ;;  %vm232_vm7 = vcmp.lt.s32.totalorder %v514_v34, 0  ;;  %vm231_vm8 = vcmp.le.f32.partialorder %v230_v43, 0.7853982 }
  0xb6   :  { %v244_v51 = vand.u32 31, %v242_v48  ;;  %v140_v52 = vand.u32 31, %v138_v49  ;;  %v528_v53 = vshrl.u32 %v242_v48, 5  ;;  %v139_v55 = vshrl.u32 %v138_v49, 5 }
  0xb8   :  { %v530_v54 = vsub.s32 32, %v244_v51  ;;  %v256_v58 = vshll.u32 %v475_v57, %v244_v51  ;;  %v259_v60 = vshll.u32 %v476_v59, %v244_v51  ;;  %v141_v61 = vsub.s32 32, %v140_v52 }
  0xb9   :  { %v152_v2 = vshll.u32 %v475_v57, %v140_v52  ;;  %v155_v3 = vshll.u32 %v476_v59, %v140_v52  ;;  %vm265_vm9 = vcmp.lt.s32.totalorder %v528_v53, 4  ;;  %v143_v7 = vshll.u32 %v478_v6, %v140_v52 }
  0xba   :  { %v257_v63 = vshrl.u32 %v476_v59, %v530_v54  ;;  %v260_v1 = vshrl.u32 %v477_v0, %v530_v54  ;;  %v153_v4 = vshrl.u32 %v476_v59, %v141_v61  ;;  %v156_v5 = vshrl.u32 %v477_v0, %v141_v61 }
  0xbb   :  { %v144_v9 = vshrl.u32 %v479_v8, %v141_v61  ;;  %vm161_vm10 = vcmp.lt.s32.totalorder %v139_v55, 4  ;;  %v146_v10 = vshll.u32 %v479_v8, %v140_v52  ;;  %v147_v12 = vshrl.u32 %v480_v11, %v141_v61 }
  0xbc   :  { %v149_v13 = vshll.u32 %v480_v11, %v140_v52  ;;  %v154_v14 = vor.u32 %v153_v4, %v152_v2  ;;  %v157_v15 = vor.u32 %v156_v5, %v155_v3  ;;  %v150_v17 = vshrl.u32 %v475_v57, %v141_v61 }
  0xbd   :  { %v145_v16 = vor.u32 %v144_v9, %v143_v7  ;;  %v258_v18 = vor.u32 %v257_v63, %v256_v58  ;;  %v261_v19 = vor.u32 %v260_v1, %v259_v60  ;;  %v142_v20 = vshrl.u32 %v478_v6, %v141_v61 }
  0xbe   :  { %v148_v21 = vor.u32 %v147_v12, %v146_v10  ;;  %v167_v22 = vsel %vm161_vm10, %v154_v14, 920167782  ;;  %v171_v23 = vsel %vm161_vm10, %v157_v15, 1326507024  ;;  %v151_v24 = vor.u32 %v150_v17, %v149_v13 }
  0xbf   :  { %vm158_vm11 = vcmp.lt.s32.totalorder %v139_v55, 1  ;;  %vm159_vm12 = vcmp.lt.s32.totalorder %v139_v55, 2  ;;  %vm160_vm13 = vcmp.lt.s32.totalorder %v139_v55, 3  ;;  %v247_v36 = vshll.u32 %v478_v6, %v244_v51 }
  0xc0   :  { %v162_v25 = vsel %vm158_vm11, %v142_v20, %v145_v16  ;;  %v166_v26 = vsel %vm158_vm11, %v145_v16, %v148_v21  ;;  %v163_v27 = vsel %vm161_vm10, %v151_v24, 2102212464  ;;  %v168_v28 = vsel %vm160_vm13, %v151_v24, %v167_v22 }
  0xc1   :  { %v170_v29 = vsel %vm158_vm11, %v148_v21, %v151_v24  ;;  %v172_v30 = vsel %vm160_vm13, %v154_v14, %v171_v23  ;;  %v164_v31 = vsel %vm160_vm13, %v148_v21, %v163_v27  ;;  %v169_v32 = vsel %vm159_vm12, %v166_v26, %v168_v28 }
  0xc2   :  { %v173_v33 = vsel %vm159_vm12, %v170_v29, %v172_v30  ;;  %v165_v37 = vsel %vm159_vm12, %v162_v25, %v164_v31  ;;  %v248_v41 = vshrl.u32 %v479_v8, %v530_v54  ;;  %v275_v42 = vsel %vm265_vm9, %v261_v19, 1326507024 }
  0xc3   :  { %v542_v39 = vmul.u32.u64.low %v533_v62, %v173_v33  ;;  %v543_v40 = vmul.u32.u64.high %v533_v62, %v173_v33, %v542_v39  ;;  %v549_v44 = vmul.u32.u64.low %v533_v62, %v169_v32  ;;  %v550_v45 = vmul.u32.u64.high %v533_v62, %v169_v32, %v549_v44 }
  0xc4   :  { %v250_v46 = vshll.u32 %v479_v8, %v244_v51  ;;  %v249_v48 = vor.u32 %v248_v41, %v247_v36  ;;  %v251_v49 = vshrl.u32 %v480_v11, %v530_v54  ;;  %v253_v50 = vshll.u32 %v480_v11, %v244_v51 }
  0xc5   :  { %v254_v52 = vshrl.u32 %v475_v57, %v530_v54  ;;  %v271_v55 = vsel %vm265_vm9, %v258_v18, 920167782  ;;  %v181_v58 = vmul.u32 %v533_v62, %v165_v37  ;;  %v246_v59 = vshrl.u32 %v478_v6, %v530_v54 }
  0xc6   :  { %v278_v60 = vshll.u32 %v238_v56, 8  ;;  %vm183_vm14 = vc.u32 %v543_v40, %v549_v44  ;;  %v252_v61 = vor.u32 %v251_v49, %v250_v46  ;;  %vm264_vm15 = vcmp.lt.s32.totalorder %v528_v53, 3 }
  0xc7   :  { %v255_v63 = vor.u32 %v254_v52, %v253_v50  ;;  %v184_v51 = vadd.s32 1, %v550_v45  ;;  %vm262_vm0 = vcmp.lt.s32.totalorder %v528_v53, 1  ;;  %vm263_vm1 = vcmp.lt.s32.totalorder %v528_v53, 2 }
  0xc8   :  { %v276_v57 = vsel %vm264_vm15, %v258_v18, %v275_v42  ;;  %v270_v54 = vsel %vm262_vm0, %v249_v48, %v252_v61  ;;  %v266_v1 = vsel %vm262_vm0, %v246_v59, %v249_v48  ;;  %v182_v28 = vadd.s32 %v549_v44, %v543_v40 }
  0xc9   :  { %v267_v62 = vsel %vm265_vm9, %v255_v63, 2102212464  ;;  %v272_v0 = vsel %vm264_vm15, %v255_v63, %v271_v55  ;;  %v274_v47 = vsel %vm262_vm0, %v252_v61, %v255_v63  ;;  %v185_v56 = vsel %vm183_vm14, %v184_v51, %v550_v45 }
  0xca   :  { %v273_v2 = vsel %vm263_vm1, %v270_v54, %v272_v0  ;;  %v277_v3 = vsel %vm263_vm1, %v274_v47, %v276_v57  ;;  %v186_v4 = vadd.s32 %v185_v56, %v181_v58  ;;  %v268_v5 = vsel %vm264_vm15, %v252_v61, %v267_v62 }
  0xcb   :  { %v572_v6 = vmul.u32.u64.low %v278_v60, %v277_v3  ;;  %v573_v7 = vmul.u32.u64.high %v278_v60, %v277_v3, %v572_v6  ;;  %v575_v8 = vmul.u32.u64.low %v278_v60, %v273_v2  ;;  %v576_v9 = vmul.u32.u64.high %v278_v60, %v273_v2, %v575_v8 }
  0xcc   :  { %v187_v10 = vadd.s32 536870912, %v186_v4  ;;  %v269_v11 = vsel %vm263_vm1, %v266_v1, %v268_v5  ;;  %vm218_vm12 = vweird.f32 %v516_v35  ;;  %vm322_vm0 = vweird.f32 %v514_v34 }
  0xcd   :  { %vm287_vm2 = vc.u32 %v573_v7, %v575_v8  ;;  %v288_v13 = vadd.s32 1, %v576_v9  ;;  %v285_v15 = vmul.u32 %v278_v60, %v269_v11  ;;  %v286_v50 = vadd.s32 %v575_v8, %v573_v7 }
  0xce   :  { %v188_v12 = vshrl.u32 %v187_v10, 30 }
  0xcf   :  { %v289_v16 = vsel %vm287_vm2, %v288_v13, %v576_v9 }
  0xd0   :  { %v189_v14 = vshll.u32 %v188_v12, 30  ;;  %v290_v18 = vadd.s32 %v289_v16, %v285_v15  ;;  %v212_v61 = vsub.s32 4, %v188_v12 }
  0xd2   :  { %v190_v17 = vsub.s32 %v186_v4, %v189_v14  ;;  %v291_v20 = vadd.s32 536870912, %v290_v18  ;;  %v213_v0 = vsel %vm128_vm5, %v212_v61, %v188_v12 }
  0xd3   :  { %v215_v2 = vsel %vm127_vm6, 0, %v213_v0 }
  0xd4   :  { %v192_v19 = vsub.s32 0, %v190_v17  ;;  %v292_v22 = vshrl.u32 %v291_v20, 30  ;;  %v219_v5 = vadd.s32 3, %v215_v2 }
  0xd6   :  { %v357_v21 = vmin.u32 %v192_v19, %v190_v17  ;;  %v293_v24 = vshll.u32 %v292_v22, 30  ;;  %v316_v4 = vsub.s32 4, %v292_v22  ;;  %v220_v8 = vand.u32 3, %v219_v5 }
  0xd8   :  { %v194_v23 = vclz %v357_v21  ;;  %v294_v53 = vsub.s32 %v290_v18, %v293_v24  ;;  %v317_v7 = vsel %vm232_vm7, %v316_v4, %v292_v22  ;;  %vm225_vm9 = vcmp.eq.s32.totalorder %v220_v8, 2 }
  0xd9   :  { %v319_v10 = vsel %vm231_vm8, 0, %v317_v7  ;;  %vm222_vm10 = vcmp.eq.s32.totalorder %v220_v8, 0  ;;  %vm221_vm11 = vcmp.lt.s32.totalorder %v220_v8, 2 }
  0xda   :  { %v358_v25 = vadd.s32 4294967294, %v194_v23  ;;  %v296_v27 = vsub.s32 0, %v294_v53  ;;  %v323_v15 = vadd.s32 3, %v319_v10 }
  0xdc   :  { %vm359_vm3 = vcmp.lt.s32.totalorder %v358_v25, 0  ;;  %v361_v31 = vmin.u32 %v296_v27, %v294_v53  ;;  %v324_v18 = vand.u32 3, %v323_v15 }
  0xdd   :  { %v197_v26 = vsel %vm359_vm3, 0, %v358_v25 }
  0xde   :  { %v198_v29 = vsub.s32 32, %v197_v26  ;;  %v202_v30 = vsub.s32 4294967266, %v197_v26  ;;  %v199_v32 = vshll.u32 %v190_v17, %v197_v26  ;;  %v298_v37 = vclz %v361_v31 }
  0xdf   :  { %vm329_vm13 = vcmp.eq.s32.totalorder %v324_v18, 2  ;;  %vm326_vm14 = vcmp.eq.s32.totalorder %v324_v18, 0  ;;  %vm325_vm15 = vcmp.lt.s32.totalorder %v324_v18, 2 }
  0xe0   :  { %v200_v33 = vshrl.u32 %v182_v28, %v198_v29  ;;  %v203_v36 = vadd.s32 127, %v202_v30  ;;  %v362_v42 = vadd.s32 4294967294, %v298_v37 }
  0xe2   :  { %v201_v39 = vor.u32 %v200_v33, %v199_v32  ;;  %v204_v41 = vshll.u32 %v203_v36, 23  ;;  %vm363_vm4 = vcmp.lt.s32.totalorder %v362_v42, 0 }
  0xe3   :  { %v301_v49 = vsel %vm363_vm4, 0, %v362_v42 }
  0xe4   :  { %v205_v45 = vor.u32 4788187, %v204_v41  ;;  %v208_v48 = vcvt.s32.f32 %v201_v39  ;;  %v302_v52 = vsub.s32 32, %v301_v49  ;;  %v306_v55 = vsub.s32 4294967266, %v301_v49 }
  0xe5   :  { %v303_v44 = vshll.u32 %v294_v53, %v301_v49 }
  0xe6   :  { %v206_v46 = vand.u32 2147483647, %v205_v45  ;;  %v304_v58 = vshrl.u32 %v286_v50, %v302_v52  ;;  %v307_v59 = vadd.s32 127, %v306_v55 }
  0xe8   :  { %v209_v40 = vmul.f32 %v208_v48, %v206_v46  ;;  %v305_v63 = vor.u32 %v304_v58, %v303_v44  ;;  %v308_v51 = vshll.u32 %v307_v59, 23 }
  0xea   :  { %v210_v60 = vxor.u32 2147483648, %v209_v40  ;;  %v309_v54 = vor.u32 4788187, %v308_v51  ;;  %v312_v56 = vcvt.s32.f32 %v305_v63 }
  0xec   :  { %v211_v57 = vsel %vm128_vm5, %v210_v60, %v209_v40  ;;  %v310_v47 = vand.u32 2147483647, %v309_v54 }
  0xed   :  { %v214_v62 = vsel %vm127_vm6, %v516_v35, %v211_v57 }
  0xee   :  { %390 = vcosq.f32 %v214_v62  ;;  %v313_v1 = vmul.f32 %v312_v56, %v310_v47 }
  0xef   :  { %392 = vsinq.f32 %v214_v62 }
  0xf0   :  { %v314_v3 = vxor.u32 2147483648, %v313_v1 }
  0xf2   :  { %v315_v38 = vsel %vm232_vm7, %v314_v3, %v313_v1 }
  0xf3   :  { %v318_v6 = vsel %vm231_vm8, %v514_v34, %v315_v38 }
  0xf4   :  { %394 = vcosq.f32 %v318_v6 }
  0xf5   :  { %396 = vsinq.f32 %v318_v6 }
  0xfb   :  { %v391_v9 = vpop.eup %390 }
  0xfc   :  { %v393_v11 = vpop.eup %392  ;;  %v226_v12 = vxor.u32 2147483648, %v391_v9 }
  0xfd   :  { %v223_v13 = vxor.u32 2147483648, %v393_v11 }
  0xfe   :  { %v227_v14 = vsel %vm225_vm9, %v226_v12, %v393_v11 }
  0xff   :  { %v224_v16 = vsel %vm222_vm10, %v391_v9, %v223_v13 }
 0x100   :  { %v228_v43 = vsel %vm221_vm11, %v224_v16, %v227_v14 }
 0x101   :  { %v229_v17 = vsel %vm218_vm12, nan, %v228_v43  ;;  %v395_v19 = vpop.eup %394 }
 0x102   :  { %334 = vst [vmem:[#allocation7] sm:$0xff] %v229_v17  ;;  %v397_v20 = vpop.eup %396  ;;  %v330_v21 = vxor.u32 2147483648, %v395_v19 }
 0x103   :  { %v327_v22 = vxor.u32 2147483648, %v397_v20 }
 0x104   :  { %v331_v23 = vsel %vm329_vm13, %v330_v21, %v397_v20 }
 0x105   :  { %v328_v24 = vsel %vm326_vm14, %v395_v19, %v327_v22 }
 0x106   :  { %v332_v25 = vsel %vm325_vm15, %v328_v24, %v331_v23 }
 0x107   :  { %v333_v35 = vsel %vm322_vm0, nan, %v332_v25 }
 0x108   :  { %335 = vst [vmem:[#allocation7 + $0x8] sm:$0xff] %v333_v35 }
 0x109   :  { %449 = shalt.err (!%p446_p0)
}
 0x10a   :  { %347 = dma.vmem_to_hbm [thread:$0]  %s342_s5, 256, %s604_s3, [#allocation4], %s466_s21, %s466_s21, %s467_s22  }
 0x10b   :  { %462 = dma.done.wait [#allocation4], 256  }
 0x10c   :  { %463 = vsyncadd [#allocation4], 4294967040 }
 0x10d   :  { %351 = vsyncpa [#allocation3], 1 }
 0x10e   :  { %352 = vsyncpa [#allocation6], 1 }
 0x10f   :  { %353 = vsyncpa [#allocation4], 1 }

</bundles_post_ra>
